<compile_context>
chip_gen: v7x
topology: tpu7x:2x2x1
jax: 0.10.0
libtpu: 0.0.40
codegen_flags: <defaults>
</compile_context>

<pallas_src>
import jax
import jax.numpy as jnp
from jax.experimental import pallas as pl
from jax.experimental.pallas import tpu as pltpu

_LANES = 128
_SUBLANES = 8


def _round_up(n, m):
    return ((n + m - 1) // m) * m


def adv_net_kernel(x_ref, w1_ref, b1_ref, w2_ref, b2_ref, w3_ref, b3_ref, o_ref):
    # ad_layer1 + relu1   (dropout1 == identity at eval). bf16 MXU dot, f32 accumulate.
    x_bf16 = x_ref[...].astype(jnp.bfloat16)
    h1 = jnp.dot(x_bf16, w1_ref[...], preferred_element_type=jnp.float32)
    h1 = jnp.maximum(h1 + b1_ref[...], 0.0)

    # ad_layer2 + relu2   (dropout2 == identity at eval). bf16 h1 halves the VMEM
    # temporary traffic between the two dots (v5e has only 1 vst slot).
    h2 = jnp.dot(h1.astype(jnp.bfloat16), w2_ref[...],
                 preferred_element_type=jnp.float32)
    h2 = jnp.maximum(h2 + b2_ref[...], 0.0)

    # ad_layer3 (out_features == 1): VPU multiply + XLU lane reduce, no MXU pass.
    y = jnp.sum(h2 * w3_ref[...], axis=-1, keepdims=True) + b3_ref[...]   # (TB, 1) f32

    # sigmoid on the EUP: exp + approximate reciprocal (no VALU divide).
    # NOTE: exp(-y) overflows to inf for very negative logits; the resulting 0.0
    # matches sigmoid's limit (slightly different path than jax.nn.sigmoid).
    s = pl.reciprocal(1.0 + jnp.exp(-y), approx=True)                     # (TB, 1)

    # Transposed lane-dense store: (TB, 1) -> (1, TB) is one small XLU relayout per
    # tile; HBM writeback is 4 B/row instead of 512 B/row (old 128x replication).
    o_ref[...] = jnp.transpose(s)[None, :, :]                             # (1, 1, TB)


def adversarial_network_forward(x, w1, b1, w2, b2, w3, b3, *, block_batch=512):
    """x: (B, F); w1: (F, H); b1: (1, H); w2: (H, H); b2: (1, H); w3: (H, 1); b3: (1, 1)."""
    B, F = x.shape
    H = w1.shape[1]

    # Lane-dense padding of feature / hidden dims (exact: zero rows/cols contribute 0,
    # relu(0) == 0, zero w3 entries contribute 0). No-op when already multiples of 128.
    F_pad = _round_up(F, _LANES)
    H_pad = _round_up(H, _LANES)
    if F_pad != F:
        x = jnp.pad(x, ((0, 0), (0, F_pad - F)))

    # MXU weights in bf16 (native MXU path on v5e/v6e/v7x, half the resident VMEM);
    # biases and the final H->1 row stay f32 (all VPU/EUP work is done in f32).
    w1p = jnp.pad(w1, ((0, F_pad - F), (0, H_pad - H))).astype(jnp.bfloat16)
    w2p = jnp.pad(w2, ((0, H_pad - H), (0, H_pad - H))).astype(jnp.bfloat16)
    b1p = jnp.pad(b1.reshape(1, H), ((0, 0), (0, H_pad - H))).astype(jnp.float32)
    b2p = jnp.pad(b2.reshape(1, H), ((0, 0), (0, H_pad - H))).astype(jnp.float32)
    w3p = jnp.pad(w3.reshape(1, H), ((0, 0), (0, H_pad - H))).astype(jnp.float32)
    b3p = b3.reshape(1, 1).astype(jnp.float32)

    # Batch tiling: multiples of 8 (f32 sublane). No full-batch jnp.pad copy -- partial
    # boundary blocks are handled by the Pallas pipeline; garbage rows from any partial
    # last tile are dropped by the wrapper slice below.
    B_aligned = _round_up(B, _SUBLANES)
    TB = min(block_batch, B_aligned)
    if B_aligned >= 2 * _SUBLANES and TB >= B:
        # Guarantee >= 2 grid steps so the "parallel" batch axis feeds both v7x TCs.
        TB = _round_up(pl.cdiv(B_aligned, 2), _SUBLANES)
    num_tiles = pl.cdiv(B, TB)

    def resident(shape):
        # Constant index_map -> fetched once, VMEM-resident. Single-buffered: a refetch
        # can never happen, so the default double-buffer would be pure VMEM waste.
        return pl.BlockSpec(shape, lambda i: (0, 0), pipeline_mode=pl.Buffered(1))

    # VMEM budget: single-buffered bf16 weights + f32 biases, double-buffered x / out
    # tiles, f32 hidden temporaries and their bf16 casts. Capped at 85% of physical
    # VMEM (v7x: 64 MiB/TC -> ~54 MiB; v5e/v6e: 128 MiB -> ~108 MiB) for headroom.
    est = (
        2 * (F_pad * H_pad + H_pad * H_pad)      # w1, w2 (bf16, Buffered(1))
        + 4 * (3 * H_pad + 1)                    # b1, b2, w3 row, b3 (f32)
        + 2 * 4 * TB * F_pad                     # x tiles (f32, double-buffered)
        + 2 * 4 * TB                             # out tiles (f32, double-buffered)
        + 4 * TB * 2 * H_pad                     # h1, h2 f32 temporaries
        + 2 * TB * (F_pad + H_pad)               # bf16 casts of the x tile and h1
    )
    try:
        phys_vmem = pltpu.get_tpu_info().vmem_capacity_bytes
    except Exception:
        phys_vmem = 64 * 1024 * 1024             # conservative fallback (v7x per-TC)
    cap = int(phys_vmem * 0.85)
    vmem_limit = int(min(max(2 * est, 16 * 1024 * 1024), cap))
    # TODO(synk): for CDAN-scale in_feature where bf16 w1 alone exceeds ~60% of VMEM,
    # add a K (feature) grid axis ("arbitrary", last) with an f32 accumulator instead
    # of keeping w1 fully resident.

    out = pl.pallas_call(
        adv_net_kernel,
        out_shape=jax.ShapeDtypeStruct((num_tiles, 1, TB), jnp.float32),
        grid=(num_tiles,),
        in_specs=[
            pl.BlockSpec((TB, F_pad), lambda i: (i, 0)),   # x: streamed batch tiles
            resident((F_pad, H_pad)),                      # w1 (bf16)
            resident((1, H_pad)),                          # b1 (f32)
            resident((H_pad, H_pad)),                      # w2 (bf16)
            resident((1, H_pad)),                          # b2 (f32)
            resident((1, H_pad)),                          # w3 as a row (f32)
            resident((1, 1)),                              # b3 (f32)
        ],
        out_specs=pl.BlockSpec((1, 1, TB), lambda i: (i, 0, 0)),
        compiler_params=pltpu.CompilerParams(
            dimension_semantics=("parallel",),             # independent batch tiles
            vmem_limit_bytes=vmem_limit,
        ),
    )(x, w1p, b1p, w2p, b2p, w3p, b3p)

    # (num_tiles, 1, TB) -> flat per-row values -> (B, 1); drops partial-tile garbage.
    return out.reshape(num_tiles * TB)[:B].reshape(B, 1)


def xavier_normal(key, fan_in, fan_out):
    # nn.init.xavier_normal_: std = sqrt(2 / (fan_in + fan_out)); stored (in, out).
    std = (2.0 / (fan_in + fan_out)) ** 0.5
    return std * jax.random.normal(key, (fan_in, fan_out), dtype=jnp.float32)


if __name__ == "__main__":
    # Small shapes consistent with AdversarialNetwork(in_feature=32, hidden_size=32).
    B, IN_FEATURE, HIDDEN = 8, 32, 32

    key = jax.random.PRNGKey(0)
    kx, k1, k2, k3 = jax.random.split(key, 4)

    x = jax.random.normal(kx, (B, IN_FEATURE), dtype=jnp.float32)

    w1 = xavier_normal(k1, IN_FEATURE, HIDDEN)
    b1 = jnp.zeros((1, HIDDEN), dtype=jnp.float32)
    w2 = xavier_normal(k2, HIDDEN, HIDDEN)
    b2 = jnp.zeros((1, HIDDEN), dtype=jnp.float32)
    w3 = xavier_normal(k3, HIDDEN, 1)
    b3 = jnp.zeros((1, 1), dtype=jnp.float32)

    y = adversarial_network_forward(x, w1, b1, w2, b2, w3, b3)
    y = jax.block_until_ready(y)

    # Pure-JAX f32 reference (tolerance loosened for bf16 MXU operands and the EUP
    # approximate-reciprocal sigmoid).
    h1 = jnp.maximum(x @ w1 + b1, 0.0)
    h2 = jnp.maximum(h1 @ w2 + b2, 0.0)
    y_ref = jax.nn.sigmoid(h2 @ w3 + b3)

    assert y.shape == (B, 1)
    max_err = float(jnp.max(jnp.abs(y - y_ref)))
    assert jnp.allclose(y, y_ref, atol=2e-2, rtol=2e-2), f"mismatch vs reference (max abs err={max_err})"

    print("KERNEL_OK")
</pallas_src>

<mosaic_0001>
module attributes {stable_mosaic.version = 11 : i64} {
  func.func @adv_net_kernel(%arg0: i32, %arg1: memref<8x128xf32, #tpu.memory_space<vmem>>, %arg2: memref<128x128xbf16, #tpu.memory_space<vmem>>, %arg3: memref<1x128xf32, #tpu.memory_space<vmem>>, %arg4: memref<128x128xbf16, #tpu.memory_space<vmem>>, %arg5: memref<1x128xf32, #tpu.memory_space<vmem>>, %arg6: memref<1x128xf32, #tpu.memory_space<vmem>>, %arg7: memref<1x1xf32, #tpu.memory_space<vmem>>, %arg8: memref<1x1x8xf32, #tpu.memory_space<vmem>>) attributes {dimension_semantics = [#tpu.dimension_semantics<parallel>], iteration_bounds = array<i64: 1>, scalar_prefetch = 0 : i64, scratch_operands = 0 : i64, tpu.core_type = #tpu.core_type<tc>, window_params = [{transform_indices = @transform_0, window_bounds = array<i64: 8, 128>}, {pipeline_mode = #tpu.pipeline_mode<synchronous>, transform_indices = @transform_1, window_bounds = array<i64: 128, 128>}, {pipeline_mode = #tpu.pipeline_mode<synchronous>, transform_indices = @transform_2, window_bounds = array<i64: 1, 128>}, {pipeline_mode = #tpu.pipeline_mode<synchronous>, transform_indices = @transform_3, window_bounds = array<i64: 128, 128>}, {pipeline_mode = #tpu.pipeline_mode<synchronous>, transform_indices = @transform_4, window_bounds = array<i64: 1, 128>}, {pipeline_mode = #tpu.pipeline_mode<synchronous>, transform_indices = @transform_5, window_bounds = array<i64: 1, 128>}, {pipeline_mode = #tpu.pipeline_mode<synchronous>, transform_indices = @transform_6, window_bounds = array<i64: 1, 1>}, {transform_indices = @transform_7, window_bounds = array<i64: 1, 1, 8>}]} {
    %c0 = arith.constant 0 : index
    %c0_0 = arith.constant 0 : index
    %0 = vector.load %arg1[%c0, %c0_0] : memref<8x128xf32, #tpu.memory_space<vmem>>, vector<8x128xf32>
    %1 = arith.truncf %0 : vector<8x128xf32> to vector<8x128xbf16>
    %c0_1 = arith.constant 0 : index
    %c0_2 = arith.constant 0 : index
    %2 = vector.load %arg2[%c0_1, %c0_2] : memref<128x128xbf16, #tpu.memory_space<vmem>>, vector<128x128xbf16>
    %cst = arith.constant dense<0.000000e+00> : vector<8x128xf32>
    %3 = tpu.matmul %1, %2, %cst {dimension_numbers = #tpu.dot_dimension_numbers<[1], [0], [0], [1], [0, 0, 1, 1], [], []>} : vector<8x128xbf16>, vector<128x128xbf16>, vector<8x128xf32> -> vector<8x128xf32>
    %c0_3 = arith.constant 0 : index
    %c0_4 = arith.constant 0 : index
    %4 = vector.load %arg3[%c0_3, %c0_4] : memref<1x128xf32, #tpu.memory_space<vmem>>, vector<1x128xf32>
    %5 = vector.broadcast %4 : vector<1x128xf32> to vector<8x128xf32>
    %6 = arith.addf %3, %5 : vector<8x128xf32>
    %cst_5 = arith.constant 0.000000e+00 : f32
    %7 = vector.broadcast %cst_5 : f32 to vector<8x128xf32>
    %8 = arith.maximumf %6, %7 : vector<8x128xf32>
    %9 = arith.truncf %8 : vector<8x128xf32> to vector<8x128xbf16>
    %c0_6 = arith.constant 0 : index
    %c0_7 = arith.constant 0 : index
    %10 = vector.load %arg4[%c0_6, %c0_7] : memref<128x128xbf16, #tpu.memory_space<vmem>>, vector<128x128xbf16>
    %cst_8 = arith.constant dense<0.000000e+00> : vector<8x128xf32>
    %11 = tpu.matmul %9, %10, %cst_8 {dimension_numbers = #tpu.dot_dimension_numbers<[1], [0], [0], [1], [0, 0, 1, 1], [], []>} : vector<8x128xbf16>, vector<128x128xbf16>, vector<8x128xf32> -> vector<8x128xf32>
    %c0_9 = arith.constant 0 : index
    %c0_10 = arith.constant 0 : index
    %12 = vector.load %arg5[%c0_9, %c0_10] : memref<1x128xf32, #tpu.memory_space<vmem>>, vector<1x128xf32>
    %13 = vector.broadcast %12 : vector<1x128xf32> to vector<8x128xf32>
    %14 = arith.addf %11, %13 : vector<8x128xf32>
    %cst_11 = arith.constant 0.000000e+00 : f32
    %15 = vector.broadcast %cst_11 : f32 to vector<8x128xf32>
    %16 = arith.maximumf %14, %15 : vector<8x128xf32>
    %c0_12 = arith.constant 0 : index
    %c0_13 = arith.constant 0 : index
    %17 = vector.load %arg6[%c0_12, %c0_13] : memref<1x128xf32, #tpu.memory_space<vmem>>, vector<1x128xf32>
    %18 = vector.broadcast %17 : vector<1x128xf32> to vector<8x128xf32>
    %19 = arith.mulf %16, %18 : vector<8x128xf32>
    %cst_14 = arith.constant dense<0.000000e+00> : vector<8xf32>
    %20 = vector.multi_reduction <add>, %19, %cst_14 [1] : vector<8x128xf32> to vector<8xf32>
    %21 = vector.shape_cast %20 : vector<8xf32> to vector<8x1xf32>
    %c0_15 = arith.constant 0 : index
    %c0_16 = arith.constant 0 : index
    %22 = vector.load %arg7[%c0_15, %c0_16] : memref<1x1xf32, #tpu.memory_space<vmem>>, vector<1x1xf32>
    %23 = vector.broadcast %22 : vector<1x1xf32> to vector<8x1xf32>
    %24 = arith.addf %21, %23 : vector<8x1xf32>
    %cst_17 = arith.constant 0.000000e+00 : f32
    %25 = vector.broadcast %cst_17 : f32 to vector<8x1xf32>
    %26 = arith.subf %25, %24 : vector<8x1xf32>
    %27 = math.exp %26 : vector<8x1xf32>
    %cst_18 = arith.constant 1.000000e+00 : f32
    %28 = vector.broadcast %cst_18 : f32 to vector<8x1xf32>
    %29 = arith.addf %28, %27 : vector<8x1xf32>
    %30 = tpu.reciprocal %29 {approx = true} : vector<8x1xf32> -> vector<8x1xf32>
    %31 = tpu.transpose %30, [1, 0] : vector<8x1xf32> -> vector<1x8xf32>
    %32 = vector.shape_cast %31 : vector<1x8xf32> to vector<1x1x8xf32>
    %c0_19 = arith.constant 0 : index
    %c0_20 = arith.constant 0 : index
    %c0_21 = arith.constant 0 : index
    %33 = vector.load %arg8[%c0_19, %c0_20, %c0_21] : memref<1x1x8xf32, #tpu.memory_space<vmem>>, vector<1x1x8xf32>
    tpu.vector_store %arg8[%c0_19, %c0_20, %c0_21], %32 {strides = array<i32>} : memref<1x1x8xf32, #tpu.memory_space<vmem>>, vector<1x1x8xf32>,
    return
  }
  func.func @transform_0(%arg0: i32) -> (i32, i32) {
    %c0_i32 = arith.constant 0 : i32
    %c0_i32_0 = arith.constant 0 : i32
    return %arg0, %c0_i32 : i32, i32
  }
  func.func @transform_1(%arg0: i32) -> (i32, i32) {
    %c0_i32 = arith.constant 0 : i32
    %c0_i32_0 = arith.constant 0 : i32
    %c0_i32_1 = arith.constant 0 : i32
    return %c0_i32, %c0_i32_0 : i32, i32
  }
  func.func @transform_2(%arg0: i32) -> (i32, i32) {
    %c0_i32 = arith.constant 0 : i32
    %c0_i32_0 = arith.constant 0 : i32
    %c0_i32_1 = arith.constant 0 : i32
    return %c0_i32, %c0_i32_0 : i32, i32
  }
  func.func @transform_3(%arg0: i32) -> (i32, i32) {
    %c0_i32 = arith.constant 0 : i32
    %c0_i32_0 = arith.constant 0 : i32
    %c0_i32_1 = arith.constant 0 : i32
    return %c0_i32, %c0_i32_0 : i32, i32
  }
  func.func @transform_4(%arg0: i32) -> (i32, i32) {
    %c0_i32 = arith.constant 0 : i32
    %c0_i32_0 = arith.constant 0 : i32
    %c0_i32_1 = arith.constant 0 : i32
    return %c0_i32, %c0_i32_0 : i32, i32
  }
  func.func @transform_5(%arg0: i32) -> (i32, i32) {
    %c0_i32 = arith.constant 0 : i32
    %c0_i32_0 = arith.constant 0 : i32
    %c0_i32_1 = arith.constant 0 : i32
    return %c0_i32, %c0_i32_0 : i32, i32
  }
  func.func @transform_6(%arg0: i32) -> (i32, i32) {
    %c0_i32 = arith.constant 0 : i32
    %c0_i32_0 = arith.constant 0 : i32
    %c0_i32_1 = arith.constant 0 : i32
    return %c0_i32, %c0_i32_0 : i32, i32
  }
  func.func @transform_7(%arg0: i32) -> (i32, i32, i32) {
    %c0_i32 = arith.constant 0 : i32
    %c0_i32_0 = arith.constant 0 : i32
    %c0_i32_1 = arith.constant 0 : i32
    return %arg0, %c0_i32, %c0_i32_0 : i32, i32, i32
  }
}

</mosaic_0001>

<bundles_post_ra>
// kernel: tpu_custom_call.1
= control target key start
LH: loop header
LB: loop body
LE: loop exit
PB: predicated region body
PF: predicated region fallthrough
CT: control target
= control target key end

     0   :  { %s683_s0 = inlined_call_operand.hbm [shape: f32[8,128], index: 0, kind: input, shape index: {}]   ;;  %s684_s1 = inlined_call_operand.hbm [shape: bf16[128,128], index: 1, kind: input, shape index: {}]   ;;  %s685_s2 = inlined_call_operand.vmem [shape: f32[1,128], index: 2, kind: input, shape index: {}]   ;;  %s686_s3 = inlined_call_operand.hbm [shape: bf16[128,128], index: 3, kind: input, shape index: {}]   ;;  %s687_s4 = inlined_call_operand.vmem [shape: f32[1,128], index: 4, kind: input, shape index: {}]   ;;  %s688_s5 = inlined_call_operand.vmem [shape: f32[1,128], index: 5, kind: input, shape index: {}]   ;;  %s689_s6 = inlined_call_operand.<no memory space> [shape: f32[1,1], index: 6, kind: input, shape index: {}]   ;;  %s690_s7 = inlined_call_operand.hbm [shape: f32[1,1,8], index: 7, kind: output, shape index: {}]  }
   0x1   :  { %v12_v0 = vstv %s689_s6 }
   0x2   :  { %13 = vst [vmem:[#allocation2] sm:$0x1] %v12_v0 }
   0x3   :  { %14 = vsyncpa [#allocation4], 0 }
   0x4   :  { %15 = vsyncpa [#allocation7], 0 }
   0x5   :  { %16 = vsyncpa [#allocation5], 0  ;;  %s569_s26 = smov [#allocation6]   ;;  %s475_s30 = scalar_lea.hbm %s684_s1, 1024 }
   0x6   :  { %s32_s27 = sshll.u32 %s569_s26, 4  ;;  %p476_p0 = scmp.ne.s32.totalorder %s684_s1, %s475_s30  ;;  %s33_s27 = int_to_ptr.vmem [resolvable:$true] %s32_s27 }
   0x7   :  { %p479_p1 = scmp.lt.u32.totalorder %s475_s30, %s684_s1 }
   0x9   :  { %p481_p2 = pnand %p479_p1, %p476_p0 }
   0xb   :  { %484 = shalt.err (!%p481_p2)
}
   0xc   :  { %s485_s6 = scalar_lea.vmem %s33_s27, 1024  ;;  %p490_p4 = scmp.lt.s32.totalorder %s33_s27, %s33_s27 }
   0xd   :  { %p486_p3 = scmp.ne.s32.totalorder %s33_s27, %s485_s6  ;;  %p491_p5 = scmp.lt.s32.totalorder %s485_s6, %s485_s6 }
   0xf   :  { %p492_p6 = por %p491_p5, %p490_p4 }
  0x11   :  { %p493_p7 = pnand %p492_p6, %p486_p3 }
  0x13   :  { %496 = shalt.err (!%p493_p7)
}
  0x14   :  { %s570_s12 = smov 64   ;;  %s571_s13 = smov 4  }
  0x15   :  { %38 = dma.hbm_to_vmem [thread:$0]  %s684_s1, 1024, %s33_s27, [#allocation7], %s570_s12, %s570_s12, %s571_s13  }
  0x16   :  { %s572_s16 = smov [#allocation3]   ;;  %s573_s18 = smov [#allocation8]  }
  0x17   :  { %s23_s17 = sshll.u32 %s572_s16, 4  ;;  %s46_s19 = sshll.u32 %s573_s18, 4  ;;  %s24_s17 = int_to_ptr.vmem [resolvable:$true] %s23_s17  ;;  %s47_s19 = int_to_ptr.vmem [resolvable:$true] %s46_s19 }
  0x18   :  { %s497_s22 = scalar_lea.hbm %s683_s0, 128 }
  0x19   :  { %p498_p8 = scmp.ne.s32.totalorder %s683_s0, %s497_s22  ;;  %p501_p9 = scmp.lt.u32.totalorder %s497_s22, %s683_s0 }
  0x1b   :  { %p503_p10 = pnand %p501_p9, %p498_p8 }
  0x1d   :  { %506 = shalt.err (!%p503_p10)
}
  0x1e   :  { %s507_s1 = scalar_lea.vmem %s24_s17, 128  ;;  %p512_p12 = scmp.lt.s32.totalorder %s24_s17, %s24_s17 }
  0x1f   :  { %p508_p11 = scmp.ne.s32.totalorder %s24_s17, %s507_s1  ;;  %p513_p13 = scmp.lt.s32.totalorder %s507_s1, %s507_s1 }
  0x21   :  { %p514_p0 = por %p513_p13, %p512_p12 }
  0x23   :  { %p515_p1 = pnand %p514_p0, %p508_p11 }
  0x25   :  { %518 = shalt.err (!%p515_p1)
}
  0x26   :  { %26 = dma.hbm_to_vmem [thread:$0]  %s683_s0, 128, %s24_s17, [#allocation4]  }
  0x27   :  { %s519_s8 = scalar_lea.hbm %s686_s3, 1024 }
  0x28   :  { %p520_p2 = scmp.ne.s32.totalorder %s686_s3, %s519_s8  ;;  %p523_p3 = scmp.lt.u32.totalorder %s519_s8, %s686_s3 }
  0x2a   :  { %p525_p4 = pnand %p523_p3, %p520_p2 }
  0x2c   :  { %528 = shalt.err (!%p525_p4)
}
  0x2d   :  { %s529_s14 = scalar_lea.vmem %s47_s19, 1024  ;;  %p534_p6 = scmp.lt.s32.totalorder %s47_s19, %s47_s19 }
  0x2e   :  { %p530_p5 = scmp.ne.s32.totalorder %s47_s19, %s529_s14  ;;  %p535_p7 = scmp.lt.s32.totalorder %s529_s14, %s529_s14 }
  0x30   :  { %p536_p8 = por %p535_p7, %p534_p6 }
  0x32   :  { %p537_p9 = pnand %p536_p8, %p530_p5 }
  0x34   :  { %540 = shalt.err (!%p537_p9)
}
  0x35   :  { %52 = dma.hbm_to_vmem [thread:$0]  %s686_s3, 1024, %s47_s19, [#allocation7], %s570_s12, %s570_s12, %s571_s13  }
  0x36   :  { %563 = dma.done.wait [#allocation4], 128  }
  0x37   :  { %564 = vsyncadd [#allocation4], 4294967168 }
  0x38   :  { %565 = dma.done.wait [#allocation7], 2048  }
  0x39   :  { %566 = vsyncadd [#allocation7], 4294965248  ;;  %v574_v1 = vmov 0.0   ;;  %vm575_vm0 = vmmov 0   ;;  %v455_v2 = vld [vmem:[#allocation6] sm:$0xff]   ;;  %v456_v3 = vld [vmem:[#allocation6 + $0x8] sm:$0xff]  }
  0x3a   :  { %407 = vmatprep.subr.bf16.mxu0 %v574_v1  ;;  %423 = vmatprep.mubr.msk.bf16.mxu0 %vm575_vm0, %v574_v1  ;;  %v457_v4 = vld [vmem:[#allocation6 + $0x10] sm:$0xff]   ;;  %v463_v5 = vld [vmem:[#allocation8] sm:$0xff]   ;;  %v458_v6 = vld [vmem:[#allocation6 + $0x18] sm:$0xff]   ;;  %vm351_vm1 = vcmask 57344  }
  0x3b   :  { %427 = vmatprep.subr.bf16.mxu1 %v574_v1  ;;  %443 = vmatprep.mubr.msk.bf16.mxu1 %vm575_vm0, %v574_v1  ;;  %v464_v7 = vld [vmem:[#allocation8 + $0x8] sm:$0xff]   ;;  %v459_v8 = vld [vmem:[#allocation6 + $0x20] sm:$0xff]   ;;  %v465_v9 = vld [vmem:[#allocation8 + $0x10] sm:$0xff]  }
  0x3c   :  { %408 = vmatpush3.bf16.msra.mxu0 %v455_v2  ;;  %428 = vmatpush3.bf16.msra.mxu1 %v463_v5  ;;  %v460_v10 = vld [vmem:[#allocation6 + $0x28] sm:$0xff]   ;;  %v466_v11 = vld [vmem:[#allocation8 + $0x18] sm:$0xff]   ;;  %v461_v12 = vld [vmem:[#allocation6 + $0x30] sm:$0xff]  }
  0x3d   :  { %409 = vmatprep.subr.bf16.mxu0 %v574_v1  ;;  %429 = vmatprep.subr.bf16.mxu1 %v574_v1  ;;  %v467_v13 = vld [vmem:[#allocation8 + $0x20] sm:$0xff]   ;;  %v462_v14 = vld [vmem:[#allocation6 + $0x38] sm:$0xff]   ;;  %v468_v16 = vld [vmem:[#allocation8 + $0x28] sm:$0xff]  }
  0x3e   :  { %v69_v15 = vld [vmem:[#allocation3] sm:$0xff]  ;;  %v469_v18 = vld [vmem:[#allocation8 + $0x30] sm:$0xff]  }
  0x3f   :  { %v70_v17 = vpack.c.bf16 %v69_v15, %v69_v15  ;;  %v470_v19 = vld [vmem:[#allocation8 + $0x38] sm:$0xff]   ;;  %v369_v20 = vld [vmem:[%s685_s2] ss:$0 sm:$0xff]  ;;  %s576_s2 = smov [#allocation9]  }
  0x40   :  { %410 = vmatpush3.bf16.msra.mxu0 %v456_v3  ;;  %430 = vmatpush3.bf16.msra.mxu1 %v464_v7  ;;  %v378_v28 = vld [vmem:[%s687_s4] ss:$0 sm:$0xff]  ;;  %s359_s4 = sshll.u32 %s576_s2, 4  ;;  %s360_s4 = int_to_ptr.vmem [resolvable:$true] %s359_s4 }
  0x41   :  { %411 = vmatprep.subr.bf16.mxu0 %v574_v1  ;;  %431 = vmatprep.subr.bf16.mxu1 %v574_v1  ;;  %v387_v33 = vld [vmem:[%s688_s5] ss:$0 sm:$0xff]  ;;  %s541_s5 = scalar_lea.vmem %s360_s4, 16  ;;  %s545_s19 = scalar_lea.vmem %s360_s4, 32 }
  0x42   :  { %v388_v37 = vld [vmem:[#allocation2] ss:$0 sm:$0xff]  ;;  %p542_p10 = scmp.ne.s32.totalorder %s360_s4, %s541_s5  ;;  %p546_p11 = scmp.lt.s32.totalorder %s360_s4, %s360_s4 }
  0x43   :  { %p547_p12 = scmp.lt.s32.totalorder %s545_s19, %s541_s5 }
  0x44   :  { %412 = vmatpush3.bf16.msra.mxu0 %v457_v4  ;;  %432 = vmatpush3.bf16.msra.mxu1 %v465_v9 }
  0x45   :  { %413 = vmatprep.subr.bf16.mxu0 %v574_v1  ;;  %433 = vmatprep.subr.bf16.mxu1 %v574_v1  ;;  %p548_p13 = por %p547_p12, %p546_p11 }
  0x47   :  { %p549_p0 = pnand %p548_p13, %p542_p10 }
  0x48   :  { %414 = vmatpush3.bf16.msra.mxu0 %v458_v6  ;;  %434 = vmatpush3.bf16.msra.mxu1 %v466_v11 }
  0x49   :  { %415 = vmatprep.subr.bf16.mxu0 %v574_v1  ;;  %435 = vmatprep.subr.bf16.mxu1 %v574_v1 }
  0x4c   :  { %416 = vmatpush3.bf16.msra.mxu0 %v459_v8  ;;  %436 = vmatpush3.bf16.msra.mxu1 %v467_v13 }
  0x4d   :  { %417 = vmatprep.subr.bf16.mxu0 %v574_v1  ;;  %437 = vmatprep.subr.bf16.mxu1 %v574_v1 }
  0x50   :  { %418 = vmatpush3.bf16.msra.mxu0 %v460_v10  ;;  %438 = vmatpush3.bf16.msra.mxu1 %v468_v16 }
  0x51   :  { %419 = vmatprep.subr.bf16.mxu0 %v574_v1  ;;  %439 = vmatprep.subr.bf16.mxu1 %v574_v1 }
  0x54   :  { %420 = vmatpush3.bf16.msra.mxu0 %v461_v12  ;;  %440 = vmatpush3.bf16.msra.mxu1 %v469_v18 }
  0x55   :  { %421 = vmatprep.subr.bf16.mxu0 %v574_v1  ;;  %441 = vmatprep.subr.bf16.mxu1 %v574_v1 }
  0x58   :  { %422 = vmatpush3.bf16.msra.mxu0 %v462_v14  ;;  %442 = vmatpush3.bf16.msra.mxu1 %v470_v19 }
  0x5b   :  { %424 = vmatmul.mubr.bf16.vlgmr.msra.gmra.mrb[0].mxu0 %v70_v17 }
 0x12e   :  { %v176_v21 = vpop.f32.mrb[0].mxu0 }
 0x12f   :  { %v177_v22 = vadd.f32 %v369_v20, %v176_v21  ;;  %v425_v23 = vpop.f32.mrb[1].mxu0 }
 0x130   :  { %v179_v24 = vpop.f32.mrb[2].mxu0 }
 0x131   :  { %v182_v25 = vmax.f32 %v177_v22, 0.0  ;;  %v426_v26 = vpop.f32.mrb[3].mxu0 }
 0x133   :  { %v183_v27 = vpack.c.bf16 %v182_v25, %v182_v25 }
 0x135   :  { %444 = vmatmul.mubr.bf16.vlgmr.msra.gmra.mrb[0].mxu1 %v183_v27 }
 0x208   :  { %v289_v29 = vpop.f32.mrb[0].mxu1 }
 0x209   :  { %v290_v30 = vadd.f32 %v378_v28, %v289_v29  ;;  %v445_v31 = vpop.f32.mrb[1].mxu1 }
 0x20a   :  { %v292_v32 = vpop.f32.mrb[2].mxu1 }
 0x20b   :  { %v295_v34 = vmax.f32 %v290_v30, 0.0  ;;  %v446_v35 = vpop.f32.mrb[3].mxu1 }
 0x20d   :  { %v303_v36 = vmul.f32 %v387_v33, %v295_v34 }
 0x20f   :  { %304 = vadd.xlane.f32.xlu0 %v303_v36 }
 0x29c   :  { %v305_v38 = vpop.xlane.xlu0 %304 }
 0x29d   :  { %v313_v39 = vadd.f32 %v388_v37, %v305_v38 }
 0x29f   :  { %v314_v40 = vsub.f32 0.0, %v313_v39 }
 0x2a1   :  { %v315_v41 = vmul.f32 1.442695, %v314_v40 }
 0x2a3   :  { %471 = vpow2.f32 %v315_v41 }
 0x2ad   :  { %v472_v42 = vpop.eup %471 }
 0x2ae   :  { %v317_v43 = vadd.f32 1.0, %v472_v42 }
 0x2b0   :  { %473 = vrcp.f32 %v317_v43 }
 0x2ba   :  { %v474_v44 = vpop.eup %473 }
 0x2bb   :  { %319 = vxpose.xlu0.b32.start.end [1/1] (short) (narrow) %v474_v44, 8 }
 0x33b   :  { %v335_v45 = vpop.trf.xlu0 }
 0x33c   :  { %352 = vst.msk [vmem:[#allocation9] sm:$0x1] %vm351_vm1, %v335_v45 }
 0x33d   :  { %552 = shalt.err (!%p549_p0)
}
 0x33e   :  { %s553_s22 = scalar_lea.hbm %s690_s7, 16 }
 0x33f   :  { %p554_p1 = scmp.ne.s32.totalorder %s690_s7, %s553_s22  ;;  %p557_p2 = scmp.lt.u32.totalorder %s553_s22, %s690_s7 }
 0x341   :  { %p559_p3 = pnand %p557_p2, %p554_p1 }
 0x343   :  { %562 = shalt.err (!%p559_p3)
}
 0x344   :  { %362 = dma.vmem_to_hbm [thread:$0]  %s360_s4, 16, %s690_s7, [#allocation5]  }
 0x345   :  { %567 = dma.done.wait [#allocation5], 16  }
 0x346   :  { %568 = vsyncadd [#allocation5], 4294967280 }
 0x347   :  { %366 = vsyncpa [#allocation4], 1 }
 0x348   :  { %367 = vsyncpa [#allocation7], 1 }
 0x349   :  { %368 = vsyncpa [#allocation5], 1 }

</bundles_post_ra>
